<compile_context>
chip_gen: v7x
topology: tpu7x:2x2x1
jax: 0.10.0
libtpu: 0.0.40
codegen_flags: <defaults>
</compile_context>

<pallas_src>
import functools

import jax
import jax.numpy as jnp
from jax.experimental import pallas as pl
from jax.experimental.pallas import tpu as pltpu

BN_EPS = 1e-5                            # nn.BatchNorm1d default eps
DEFAULT_BLOCK_BYTES = 2 * 1024 * 1024    # ~2 MiB activation block target


# ------------------------------ helpers --------------------------------------
def _choose_tile(rows, row_bytes, block_bytes):
    """Largest row-tile (multiple of 8, or the full extent) under the budget."""
    if rows * row_bytes <= block_bytes:
        return rows                       # single full block (always legal)
    tile = max(8, (block_bytes // row_bytes) // 8 * 8)
    return min(tile, rows)


# ------------------------------ kernels ---------------------------------------
def bn_train_fused_kernel(x_ref, gb_ref, o_ref):
    """Single-block BatchNorm1d train forward: batch stats + affine, fused.

    x block: (B, D)   gb block: (2, D) = [gamma; beta]
    Only used when the whole batch fits in one VMEM block, so the batch
    statistics are exact by construction.
    """
    x = x_ref[...].astype(jnp.float32)
    mean = jnp.mean(x, axis=0, keepdims=True)             # (1, D)
    xc = x - mean
    var = jnp.mean(xc * xc, axis=0, keepdims=True)        # biased, like PyTorch train
    gb = gb_ref[...].astype(jnp.float32)
    gamma, beta = gb[0:1, :], gb[1:2, :]
    scale = gamma * jax.lax.rsqrt(var + BN_EPS)
    o_ref[...] = (xc * scale + beta).astype(o_ref.dtype)


def bn_stats_kernel(x_ref, stats_ref, *, tile_b, total_rows):
    """Tiled pass 1 of training BN: accumulate per-feature sum / sum-of-squares.

    Output block (2, D) stays resident across the "arbitrary" batch-reduction
    grid axis (accumulator pattern).  Ragged last block is masked.
    """
    i = pl.program_id(0)

    @pl.when(i == 0)
    def _():
        stats_ref[...] = jnp.zeros_like(stats_ref)

    x = x_ref[...].astype(jnp.float32)
    row = jax.lax.broadcasted_iota(jnp.int32, x.shape, 0) + i * tile_b
    x = jnp.where(row < total_rows, x, 0.0)               # mask ragged last block
    stats_ref[...] += jnp.concatenate(
        [jnp.sum(x, axis=0, keepdims=True),
         jnp.sum(x * x, axis=0, keepdims=True)], axis=0)


def bn_norm_kernel(x_ref, p_ref, o_ref):
    """Tiled normalization with given statistics (eval mode / train pass 2).

    x block: (tile_rows, lanes)   p block: (4, lanes) = [gamma; beta; mean; var]
    Per-element work folded to one mul + one add.
    """
    p = p_ref[...].astype(jnp.float32)
    gamma, beta, mean, var = p[0:1, :], p[1:2, :], p[2:3, :], p[3:4, :]
    scale = gamma * jax.lax.rsqrt(var + BN_EPS)
    shift = beta - mean * scale
    x = x_ref[...].astype(jnp.float32)
    o_ref[...] = (x * scale + shift).astype(o_ref.dtype)


# ------------------------------ wrappers ---------------------------------------
def _bn_normalize(x, gamma, beta, mean, var, block_bytes):
    """Apply y = (x - mean) * rsqrt(var + eps) * gamma + beta, tiled & lane-packed."""
    B, D = x.shape
    itemsize = jnp.dtype(x.dtype).itemsize
    params = jnp.stack([gamma, beta, mean, var]).astype(jnp.float32)   # (4, D)

    # Lane-pack: (B, D) -> (B*D/128, 128) when D | 128 (pure row-major layout
    # plumbing); tile the per-feature params to match the packed lanes.
    if D < 128 and 128 % D == 0 and (B * D) % 128 == 0:
        pack = 128 // D
        xe = x.reshape((B * D) // 128, 128)
        pe = jnp.tile(params, (1, pack))
    else:
        xe, pe = x, params

    rows, lanes = xe.shape
    tile = _choose_tile(rows, lanes * itemsize, block_bytes)
    grid = (pl.cdiv(rows, tile),)

    out = pl.pallas_call(
        bn_norm_kernel,
        out_shape=jax.ShapeDtypeStruct(xe.shape, x.dtype),
        grid=grid,
        in_specs=[
            pl.BlockSpec((tile, lanes), lambda i: (i, 0)),
            pl.BlockSpec((4, lanes), lambda i: (0, 0)),
        ],
        out_specs=pl.BlockSpec((tile, lanes), lambda i: (i, 0)),
        compiler_params=pltpu.CompilerParams(dimension_semantics=("parallel",)),
        cost_estimate=pl.CostEstimate(
            flops=2 * B * D, transcendentals=D,
            bytes_accessed=2 * B * D * itemsize + 4 * D * 4),
    )(xe, pe)
    return out.reshape(B, D)


def _bn_train_stats(x, block_bytes):
    """Tiled per-feature sum / sum-of-squares over the batch (train pass 1)."""
    B, D = x.shape
    itemsize = jnp.dtype(x.dtype).itemsize
    tile_b = _choose_tile(B, D * itemsize, block_bytes)
    grid = (pl.cdiv(B, tile_b),)

    stats = pl.pallas_call(
        functools.partial(bn_stats_kernel, tile_b=tile_b, total_rows=B),
        out_shape=jax.ShapeDtypeStruct((2, D), jnp.float32),
        grid=grid,
        in_specs=[pl.BlockSpec((tile_b, D), lambda i: (i, 0))],
        out_specs=pl.BlockSpec((2, D), lambda i: (0, 0)),
        compiler_params=pltpu.CompilerParams(dimension_semantics=("arbitrary",)),
        cost_estimate=pl.CostEstimate(
            flops=3 * B * D, transcendentals=0,
            bytes_accessed=B * D * itemsize + 2 * D * 4),
    )(x)

    mean = stats[0] / B
    var = jnp.maximum(stats[1] / B - mean * mean, 0.0)     # biased variance
    return mean, var


def cont_embedder_forward(inp, gamma, beta, running_mean, running_var, *,
                          training=True, input_bn=True,
                          block_bytes=DEFAULT_BLOCK_BYTES):
    """Mirrors ContEmbedder.forward: takes a dict with key 'cont'."""
    x = inp["cont"]
    B, D = x.shape
    assert D != 0, "The input is empty."

    if not input_bn:
        # self.bn = nn.Identity()
        return x

    if not training:
        # Eval mode: pure elementwise normalization with running statistics.
        return _bn_normalize(x, gamma, beta, running_mean, running_var, block_bytes)

    itemsize = jnp.dtype(x.dtype).itemsize
    if B * D * itemsize <= block_bytes:
        # Small batch: one fused block (everything resident in VMEM, one launch).
        # Batch statistics are exact because tile == full batch by construction.
        gb = jnp.stack([gamma, beta]).astype(jnp.float32)      # (2, D)
        return pl.pallas_call(
            bn_train_fused_kernel,
            out_shape=jax.ShapeDtypeStruct((B, D), x.dtype),
            grid=(1,),
            in_specs=[
                pl.BlockSpec((B, D), lambda i: (0, 0)),
                pl.BlockSpec((2, D), lambda i: (0, 0)),
            ],
            out_specs=pl.BlockSpec((B, D), lambda i: (0, 0)),
            compiler_params=pltpu.CompilerParams(dimension_semantics=("arbitrary",)),
            cost_estimate=pl.CostEstimate(
                flops=5 * B * D, transcendentals=D,
                bytes_accessed=2 * B * D * itemsize + 2 * D * 4),
        )(x, gb)

    # Large batch: tiled two-pass — stats reduction, then lane-packed normalize.
    mean, var = _bn_train_stats(x, block_bytes)
    return _bn_normalize(x, gamma, beta, mean, var, block_bytes)


# ------------------------------ pure-JAX reference -----------------------------
def batchnorm1d_ref(x, gamma, beta, running_mean, running_var, training):
    if training:
        mean = jnp.mean(x, axis=0)
        var = jnp.mean((x - mean) ** 2, axis=0)
    else:
        mean, var = running_mean, running_var
    return (x - mean) * jax.lax.rsqrt(var + BN_EPS) * gamma + beta


# ------------------------------ main --------------------------------------------
if __name__ == "__main__":
    key = jax.random.PRNGKey(0)
    kx, kg, kb, km, kv, kx2 = jax.random.split(key, 6)

    BATCH, NUM_DIMS = 8, 32
    x = jax.random.normal(kx, (BATCH, NUM_DIMS), jnp.float32) * 3.0 + 1.5
    gamma = 1.0 + 0.1 * jax.random.normal(kg, (NUM_DIMS,), jnp.float32)
    beta = 0.1 * jax.random.normal(kb, (NUM_DIMS,), jnp.float32)
    running_mean = jax.random.normal(km, (NUM_DIMS,), jnp.float32)
    running_var = jnp.abs(jax.random.normal(kv, (NUM_DIMS,), jnp.float32)) + 0.5

    inp = {"cont": x}

    # Small-shape paths: fused single-block train, lane-packed eval, identity.
    out_train = cont_embedder_forward(inp, gamma, beta, running_mean, running_var,
                                      training=True)
    out_eval = cont_embedder_forward(inp, gamma, beta, running_mean, running_var,
                                     training=False)
    out_ident = cont_embedder_forward(inp, gamma, beta, running_mean, running_var,
                                      training=True, input_bn=False)
    out_train, out_eval, out_ident = jax.block_until_ready(
        (out_train, out_eval, out_ident))

    ref_train = batchnorm1d_ref(x, gamma, beta, running_mean, running_var, True)
    ref_eval = batchnorm1d_ref(x, gamma, beta, running_mean, running_var, False)

    assert out_train.shape == (BATCH, NUM_DIMS), out_train.shape   # get_out_shape parity
    assert out_eval.shape == (BATCH, NUM_DIMS), out_eval.shape
    assert bool(jnp.all(jnp.isfinite(out_train))), "non-finite output"
    assert bool(jnp.allclose(out_train, ref_train, atol=1e-5, rtol=1e-5)), \
        "train-mode BN mismatch (fused path)"
    assert bool(jnp.allclose(out_eval, ref_eval, atol=1e-5, rtol=1e-5)), \
        "eval-mode BN mismatch (lane-packed path)"
    assert bool(jnp.all(out_ident == x)), "identity (input_bn=False) mismatch"

    # Larger batch with a deliberately tiny block budget to exercise the tiled
    # cdiv grids, lane packing, ragged last blocks and the two-pass train path.
    B2 = 100
    x2 = jax.random.normal(kx2, (B2, NUM_DIMS), jnp.float32) * 3.0 + 1.5
    inp2 = {"cont": x2}
    out2_train = cont_embedder_forward(inp2, gamma, beta, running_mean, running_var,
                                       training=True, block_bytes=4096)
    out2_eval = cont_embedder_forward(inp2, gamma, beta, running_mean, running_var,
                                      training=False, block_bytes=4096)
    out2_train, out2_eval = jax.block_until_ready((out2_train, out2_eval))

    ref2_train = batchnorm1d_ref(x2, gamma, beta, running_mean, running_var, True)
    ref2_eval = batchnorm1d_ref(x2, gamma, beta, running_mean, running_var, False)
    assert bool(jnp.allclose(out2_train, ref2_train, atol=1e-4, rtol=1e-4)), \
        "train-mode BN mismatch (tiled two-pass path)"
    assert bool(jnp.allclose(out2_eval, ref2_eval, atol=1e-5, rtol=1e-5)), \
        "eval-mode BN mismatch (tiled lane-packed path)"

    print("KERNEL_OK")
</pallas_src>

<mosaic_0001>
module attributes {stable_mosaic.version = 11 : i64} {
  func.func @bn_train_fused_kernel(%arg0: i32, %arg1: memref<8x32xf32, #tpu.memory_space<vmem>>, %arg2: memref<2x32xf32, #tpu.memory_space<vmem>>, %arg3: memref<8x32xf32, #tpu.memory_space<vmem>>) attributes {dimension_semantics = [#tpu.dimension_semantics<arbitrary>], iteration_bounds = array<i64: 1>, scalar_prefetch = 0 : i64, scratch_operands = 0 : i64, tpu.core_type = #tpu.core_type<tc>, window_params = [{pipeline_mode = #tpu.pipeline_mode<synchronous>, transform_indices = @transform_0, window_bounds = array<i64: 8, 32>}, {pipeline_mode = #tpu.pipeline_mode<synchronous>, transform_indices = @transform_1, window_bounds = array<i64: 2, 32>}, {pipeline_mode = #tpu.pipeline_mode<synchronous>, transform_indices = @transform_2, window_bounds = array<i64: 8, 32>}]} {
    %c0 = arith.constant 0 : index
    %c0_0 = arith.constant 0 : index
    %0 = vector.load %arg1[%c0, %c0_0] : memref<8x32xf32, #tpu.memory_space<vmem>>, vector<8x32xf32>
    %cst = arith.constant dense<0.000000e+00> : vector<32xf32>
    %1 = vector.multi_reduction <add>, %0, %cst [0] : vector<8x32xf32> to vector<32xf32>
    %2 = vector.shape_cast %1 : vector<32xf32> to vector<1x32xf32>
    %cst_1 = arith.constant 8.000000e+00 : f32
    %3 = vector.broadcast %cst_1 : f32 to vector<1x32xf32>
    %4 = arith.divf %2, %3 : vector<1x32xf32>
    %5 = vector.broadcast %4 : vector<1x32xf32> to vector<8x32xf32>
    %6 = arith.subf %0, %5 : vector<8x32xf32>
    %7 = arith.mulf %6, %6 : vector<8x32xf32>
    %cst_2 = arith.constant dense<0.000000e+00> : vector<32xf32>
    %8 = vector.multi_reduction <add>, %7, %cst_2 [0] : vector<8x32xf32> to vector<32xf32>
    %9 = vector.shape_cast %8 : vector<32xf32> to vector<1x32xf32>
    %cst_3 = arith.constant 8.000000e+00 : f32
    %10 = vector.broadcast %cst_3 : f32 to vector<1x32xf32>
    %11 = arith.divf %9, %10 : vector<1x32xf32>
    %c0_4 = arith.constant 0 : index
    %c0_5 = arith.constant 0 : index
    %12 = vector.load %arg2[%c0_4, %c0_5] : memref<2x32xf32, #tpu.memory_space<vmem>>, vector<2x32xf32>
    %13 = vector.extract_strided_slice %12 {offsets = [0, 0], sizes = [1, 32], strides = [1, 1]} : vector<2x32xf32> to vector<1x32xf32>
    %14 = vector.extract_strided_slice %12 {offsets = [1, 0], sizes = [1, 32], strides = [1, 1]} : vector<2x32xf32> to vector<1x32xf32>
    %cst_6 = arith.constant 9.99999974E-6 : f32
    %15 = vector.broadcast %cst_6 : f32 to vector<1x32xf32>
    %16 = arith.addf %11, %15 : vector<1x32xf32>
    %17 = math.rsqrt %16 : vector<1x32xf32>
    %18 = arith.mulf %13, %17 : vector<1x32xf32>
    %19 = vector.broadcast %18 : vector<1x32xf32> to vector<8x32xf32>
    %20 = arith.mulf %6, %19 : vector<8x32xf32>
    %21 = vector.broadcast %14 : vector<1x32xf32> to vector<8x32xf32>
    %22 = arith.addf %20, %21 : vector<8x32xf32>
    %c0_7 = arith.constant 0 : index
    %c0_8 = arith.constant 0 : index
    %23 = vector.load %arg3[%c0_7, %c0_8] : memref<8x32xf32, #tpu.memory_space<vmem>>, vector<8x32xf32>
    tpu.vector_store %arg3[%c0_7, %c0_8], %22 {strides = array<i32>} : memref<8x32xf32, #tpu.memory_space<vmem>>, vector<8x32xf32>,
    return
  }
  func.func @transform_0(%arg0: i32) -> (i32, i32) {
    %c0_i32 = arith.constant 0 : i32
    %c0_i32_0 = arith.constant 0 : i32
    %c0_i32_1 = arith.constant 0 : i32
    return %c0_i32, %c0_i32_0 : i32, i32
  }
  func.func @transform_1(%arg0: i32) -> (i32, i32) {
    %c0_i32 = arith.constant 0 : i32
    %c0_i32_0 = arith.constant 0 : i32
    %c0_i32_1 = arith.constant 0 : i32
    return %c0_i32, %c0_i32_0 : i32, i32
  }
  func.func @transform_2(%arg0: i32) -> (i32, i32) {
    %c0_i32 = arith.constant 0 : i32
    %c0_i32_0 = arith.constant 0 : i32
    %c0_i32_1 = arith.constant 0 : i32
    return %c0_i32, %c0_i32_0 : i32, i32
  }
}

</mosaic_0001>

<bundles_post_ra>
// kernel: tpu_custom_call.1
= control target key start
LH: loop header
LB: loop body
LE: loop exit
PB: predicated region body
PF: predicated region fallthrough
CT: control target
= control target key end

     0   :  { %7 = vsyncpa [#allocation3], 0  ;;  %s174_s0 = inlined_call_operand.hbm [shape: f32[8,32], index: 0, kind: input, shape index: {}]   ;;  %s175_s1 = inlined_call_operand.vmem [shape: f32[2,32], index: 1, kind: input, shape index: {}]   ;;  %s176_s2 = inlined_call_operand.hbm [shape: f32[8,32], index: 2, kind: output, shape index: {}]  }
   0x1   :  { %8 = vsyncpa [#allocation4], 0  ;;  %s127_s9 = smov [#allocation2]   ;;  %s79_s13 = scalar_lea.hbm %s174_s0, 128 }
   0x2   :  { %s15_s10 = sshll.u32 %s127_s9, 4  ;;  %p80_p0 = scmp.ne.s32.totalorder %s174_s0, %s79_s13  ;;  %s16_s10 = int_to_ptr.vmem [resolvable:$true] %s15_s10 }
   0x3   :  { %p83_p1 = scmp.lt.u32.totalorder %s79_s13, %s174_s0 }
   0x5   :  { %p85_p2 = pnand %p83_p1, %p80_p0 }
   0x7   :  { %88 = shalt.err (!%p85_p2)
}
   0x8   :  { %s89_s18 = scalar_lea.vmem %s16_s10, 128  ;;  %p94_p4 = scmp.lt.s32.totalorder %s16_s10, %s16_s10 }
   0x9   :  { %p90_p3 = scmp.ne.s32.totalorder %s16_s10, %s89_s18  ;;  %p95_p5 = scmp.lt.s32.totalorder %s89_s18, %s89_s18 }
   0xb   :  { %p96_p6 = por %p95_p5, %p94_p4 }
   0xd   :  { %p97_p7 = pnand %p96_p6, %p90_p3 }
   0xf   :  { %100 = shalt.err (!%p97_p7)
}
  0x10   :  { %18 = dma.hbm_to_vmem [thread:$0]  %s174_s0, 128, %s16_s10, [#allocation3]  }
  0x11   :  { %123 = dma.done.wait [#allocation3], 128  }
  0x12   :  { %124 = vsyncadd [#allocation3], 4294967168  ;;  %vm25_vm0 = vcmask 261120   ;;  %v24_v0 = vld [vmem:[#allocation2] sm:$0xff]  ;;  %v49_v20 = vlaneseq  ;;  %s128_s22 = smov [#allocation5]  }
  0x13   :  { %v26_v1 = vsel %vm25_vm0, %v24_v0, 0.0  ;;  %v45_v22 = vld [vmem:[%s175_s1] sm:$0x3]  ;;  %s66_s23 = sshll.u32 %s128_s22, 4  ;;  %s67_s23 = int_to_ptr.vmem [resolvable:$true] %s66_s23 }
  0x14   :  { %v27_v2 = vrot.slane %v26_v1, 4  ;;  %v50_v21 = vshrl.u32 %v49_v20, 7  ;;  %s101_s24 = scalar_lea.vmem %s67_s23, 128  ;;  %p106_p9 = scmp.lt.s32.totalorder %s67_s23, %s67_s23 }
  0x15   :  { %p102_p8 = scmp.ne.s32.totalorder %s67_s23, %s101_s24  ;;  %p107_p10 = scmp.lt.s32.totalorder %s101_s24, %s101_s24 }
  0x16   :  { %v28_v3 = vadd.f32 %v27_v2, %v26_v1  ;;  %v51_v23 = vsub.s32 0, %v50_v21  ;;  %v56_v24 = vsub.s32 1, %v50_v21 }
  0x17   :  { %p108_p11 = por %p107_p10, %p106_p9 }
  0x18   :  { %v29_v4 = vrot.slane %v28_v3, 2  ;;  %v57_v28 = vrot.slane %v45_v22, %v56_v24 }
  0x19   :  { %p109_p12 = pnand %p108_p11, %p102_p8 }
  0x1a   :  { %v30_v5 = vadd.f32 %v29_v4, %v28_v3 }
  0x1c   :  { %v31_v6 = vrot.slane %v30_v5, 1 }
  0x1e   :  { %v32_v7 = vadd.f32 %v31_v6, %v30_v5 }
  0x20   :  { %v34_v8 = vmul.f32 0.125, %v32_v7 }
  0x22   :  { %v35_v9 = vsub.f32 %v24_v0, %v34_v8 }
  0x24   :  { %v36_v10 = vmul.f32 %v35_v9, %v35_v9 }
  0x26   :  { %v37_v11 = vsel %vm25_vm0, %v36_v10, 0.0 }
  0x27   :  { %v38_v12 = vrot.slane %v37_v11, 4 }
  0x29   :  { %v39_v13 = vadd.f32 %v38_v12, %v37_v11 }
  0x2b   :  { %v40_v14 = vrot.slane %v39_v13, 2 }
  0x2d   :  { %v41_v15 = vadd.f32 %v40_v14, %v39_v13 }
  0x2f   :  { %v42_v16 = vrot.slane %v41_v15, 1 }
  0x31   :  { %v43_v17 = vadd.f32 %v42_v16, %v41_v15 }
  0x33   :  { %v44_v18 = vmul.f32 0.125, %v43_v17 }
  0x35   :  { %v46_v19 = vadd.f32 1e-05, %v44_v18 }
  0x37   :  { %77 = vrsqrt.f32 %v46_v19 }
  0x41   :  { %v78_v25 = vpop.eup %77 }
  0x42   :  { %v48_v26 = vmul.f32 %v78_v25, %v45_v22 }
  0x44   :  { %v52_v27 = vrot.slane %v48_v26, %v51_v23 }
  0x46   :  { %v53_v29 = vmul.f32 %v52_v27, %v35_v9 }
  0x48   :  { %v58_v30 = vadd.f32 %v57_v28, %v53_v29 }
  0x4a   :  { %59 = vst.msk [vmem:[#allocation5] sm:$0xff] %vm25_vm0, %v58_v30 }
  0x4b   :  { %112 = shalt.err (!%p109_p12)
}
  0x4c   :  { %s113_s26 = scalar_lea.hbm %s176_s2, 128 }
  0x4d   :  { %p114_p13 = scmp.ne.s32.totalorder %s176_s2, %s113_s26  ;;  %p117_p0 = scmp.lt.u32.totalorder %s113_s26, %s176_s2 }
  0x4f   :  { %p119_p1 = pnand %p117_p0, %p114_p13 }
  0x51   :  { %122 = shalt.err (!%p119_p1)
}
  0x52   :  { %69 = dma.vmem_to_hbm [thread:$0]  %s67_s23, 128, %s176_s2, [#allocation4]  }
  0x53   :  { %125 = dma.done.wait [#allocation4], 128  }
  0x54   :  { %126 = vsyncadd [#allocation4], 4294967168 }
  0x55   :  { %73 = vsyncpa [#allocation3], 1 }
  0x56   :  { %74 = vsyncpa [#allocation4], 1 }

</bundles_post_ra>
